<compile_context>
chip_gen: v6e
topology: v6e:2x2x1
jax: 0.10.0
libtpu: 0.0.40
codegen_flags: <defaults>
</compile_context>

<pallas_src>
import functools

import jax
import jax.numpy as jnp
from jax.experimental import pallas as pl
from jax.experimental.pallas import tpu as pltpu


def _class_head_kernel(x_ref, w_ref, b_ref, o_ref):
    # x_ref: (1, Cin, T)   w_ref: (2, A, Cin)   b_ref: (2, A, 1)   o_ref: (1, 2, A, T)
    x = x_ref[0]                                                        # (Cin, T)

    # 1x1 conv == channel matmul on the MXU; spatial tile is the lane axis.
    y0 = jnp.dot(w_ref[0], x, preferred_element_type=jnp.float32) + b_ref[0]   # class-0 logits (A, T)
    y1 = jnp.dot(w_ref[1], x, preferred_element_type=jnp.float32) + b_ref[1]   # class-1 logits (A, T)

    # Pairwise LogSoftmax over the 2 classes of each anchor, softplus form (stable):
    #   o0 = -softplus(d), o1 = d - softplus(d), d = y1 - y0.
    d = y1 - y0
    sp = jnp.maximum(d, 0.0) + jnp.log(1.0 + jnp.exp(-jnp.abs(d)))
    o_ref[0, 0] = (-sp).astype(o_ref.dtype)                             # log p(class 0)
    o_ref[0, 1] = (d - sp).astype(o_ref.dtype)                          # log p(class 1)


@functools.partial(jax.jit, static_argnames=("num_anchors", "tile_hw"))
def class_head_forward(x_nchw, weight, bias, *, num_anchors=3, tile_hw=2048):
    """Pallas implementation of ClassHead.forward.

    x_nchw : (B, Cin, H, W)   float32
    weight : (A*2, Cin, 1, 1) float32  (PyTorch Conv2d layout, out-channel o = anchor*2 + class)
    bias   : (A*2,)           float32
    returns: (B, H*W*A, 2)    float32
    """
    B, Cin, H, W = x_nchw.shape
    A = num_anchors
    HW = H * W

    # NCHW -> (B, Cin, H*W): a pure view, no extra HBM pass.
    x3d = x_nchw.reshape(B, Cin, HW)

    # Reorder conv out-channels into a (2, A, Cin) block: [class][anchor][cin].
    w2d = weight.reshape(2 * A, Cin)                                    # row o = a*2 + c
    w = jnp.transpose(w2d.reshape(A, 2, Cin), (1, 0, 2))                # (2, A, Cin)
    b = jnp.transpose(bias.reshape(A, 2), (1, 0)).reshape(2, A, 1)      # (2, A, 1)

    # Spatial tile: as large as a ~4 MiB (double-buffered) x tile allows, multiple of 128;
    # stays inside v5e's 16 MiB scoped-VMEM default and v7x's 64 MiB physical VMEM.
    max_thw = max(128, (4 * 1024 * 1024 // (Cin * 4)) // 128 * 128)
    thw = min(tile_hw, max_thw)
    if HW <= thw:
        thw = HW                                                        # full-dim block (always legal)
    grid = (B, pl.cdiv(HW, thw))

    y = pl.pallas_call(
        _class_head_kernel,
        out_shape=jax.ShapeDtypeStruct((B, 2, A, HW), jnp.float32),
        grid_spec=pltpu.PrefetchScalarGridSpec(
            num_scalar_prefetch=0,
            grid=grid,
            in_specs=[
                pl.BlockSpec((1, Cin, thw), lambda bi, si: (bi, 0, si)),     # x tile
                pl.BlockSpec((2, A, Cin), lambda bi, si: (0, 0, 0)),         # weights (resident)
                pl.BlockSpec((2, A, 1), lambda bi, si: (0, 0, 0)),           # bias    (resident)
            ],
            out_specs=pl.BlockSpec((1, 2, A, thw), lambda bi, si: (bi, 0, 0, si)),
        ),
        compiler_params=pltpu.CompilerParams(
            dimension_semantics=("parallel", "parallel"),
        ),
    )(x3d, w, b)

    # y[b, c, a, hw] -> (B, HW*A, 2) with rows ordered [(h,w), anchor] and class last,
    # matching out.view(b, h, w, A, 2).view(b, -1, 2) in the PyTorch module.
    # (Transposing the small output is ~Cin/(2A) x cheaper than transposing x.)
    out = jnp.transpose(y, (0, 3, 2, 1)).reshape(B, HW * A, 2)
    return out


if __name__ == "__main__":
    # Small, module-consistent shapes.
    B, Cin, H, W = 2, 32, 16, 16
    A = 3

    key = jax.random.PRNGKey(0)
    kx, kw, kb = jax.random.split(key, 3)
    x = jax.random.normal(kx, (B, Cin, H, W), dtype=jnp.float32)
    weight = jax.random.normal(kw, (A * 2, Cin, 1, 1), dtype=jnp.float32) * 0.05
    bias = jax.random.normal(kb, (A * 2,), dtype=jnp.float32) * 0.05

    out = class_head_forward(x, weight, bias, num_anchors=A)
    out = jax.block_until_ready(out)
    assert out.shape == (B, H * W * A, 2), out.shape

    # Pure-JAX reference.
    y = jnp.einsum("bchw,oc->bhwo", x, weight.reshape(A * 2, Cin)) + bias
    y = y.reshape(B, H, W, A, 2)
    ref = jax.nn.log_softmax(y, axis=-1).reshape(B, H * W * A, 2)
    assert jnp.allclose(out, ref, atol=1e-5, rtol=1e-5), float(jnp.abs(out - ref).max())

    print("KERNEL_OK")
</pallas_src>

<mosaic_0001>
module attributes {stable_mosaic.version = 11 : i64} {
  func.func @_class_head_kernel(%arg0: i32, %arg1: i32, %arg2: memref<1x32x256xf32, #tpu.memory_space<vmem>>, %arg3: memref<2x3x32xf32, #tpu.memory_space<vmem>>, %arg4: memref<2x3x1xf32, #tpu.memory_space<vmem>>, %arg5: memref<1x2x3x256xf32, #tpu.memory_space<vmem>>) attributes {dimension_semantics = [#tpu.dimension_semantics<parallel>, #tpu.dimension_semantics<parallel>], iteration_bounds = array<i64: 2, 1>, scalar_prefetch = 0 : i64, scratch_operands = 0 : i64, tpu.core_type = #tpu.core_type<tc>, window_params = [{transform_indices = @transform_0, window_bounds = array<i64: 1, 32, 256>}, {pipeline_mode = #tpu.pipeline_mode<synchronous>, transform_indices = @transform_1, window_bounds = array<i64: 2, 3, 32>}, {pipeline_mode = #tpu.pipeline_mode<synchronous>, transform_indices = @transform_2, window_bounds = array<i64: 2, 3, 1>}, {transform_indices = @transform_3, window_bounds = array<i64: 1, 2, 3, 256>}]} {
    %c0 = arith.constant 0 : index
    %c0_0 = arith.constant 0 : index
    %c0_1 = arith.constant 0 : index
    %0 = vector.load %arg2[%c0, %c0_0, %c0_1] : memref<1x32x256xf32, #tpu.memory_space<vmem>>, vector<1x32x256xf32>
    %1 = vector.shape_cast %0 : vector<1x32x256xf32> to vector<32x256xf32>
    %c0_2 = arith.constant 0 : index
    %c0_3 = arith.constant 0 : index
    %c0_4 = arith.constant 0 : index
    %2 = vector.load %arg3[%c0_2, %c0_3, %c0_4] : memref<2x3x32xf32, #tpu.memory_space<vmem>>, vector<1x3x32xf32>
    %3 = vector.shape_cast %2 : vector<1x3x32xf32> to vector<3x32xf32>
    %cst = arith.constant dense<0.000000e+00> : vector<3x256xf32>
    %4 = tpu.matmul %3, %1, %cst {dimension_numbers = #tpu.dot_dimension_numbers<[1], [0], [0], [1], [0, 0, 1, 1], [], []>} : vector<3x32xf32>, vector<32x256xf32>, vector<3x256xf32> -> vector<3x256xf32>
    %c0_5 = arith.constant 0 : index
    %c0_6 = arith.constant 0 : index
    %c0_7 = arith.constant 0 : index
    %5 = vector.load %arg4[%c0_5, %c0_6, %c0_7] : memref<2x3x1xf32, #tpu.memory_space<vmem>>, vector<1x3x1xf32>
    %6 = vector.shape_cast %5 : vector<1x3x1xf32> to vector<3x1xf32>
    %7 = vector.broadcast %6 : vector<3x1xf32> to vector<3x256xf32>
    %8 = arith.addf %4, %7 : vector<3x256xf32>
    %c1 = arith.constant 1 : index
    %c0_8 = arith.constant 0 : index
    %c0_9 = arith.constant 0 : index
    %9 = vector.load %arg3[%c1, %c0_8, %c0_9] : memref<2x3x32xf32, #tpu.memory_space<vmem>>, vector<1x3x32xf32>
    %10 = vector.shape_cast %9 : vector<1x3x32xf32> to vector<3x32xf32>
    %cst_10 = arith.constant dense<0.000000e+00> : vector<3x256xf32>
    %11 = tpu.matmul %10, %1, %cst_10 {dimension_numbers = #tpu.dot_dimension_numbers<[1], [0], [0], [1], [0, 0, 1, 1], [], []>} : vector<3x32xf32>, vector<32x256xf32>, vector<3x256xf32> -> vector<3x256xf32>
    %c1_11 = arith.constant 1 : index
    %c0_12 = arith.constant 0 : index
    %c0_13 = arith.constant 0 : index
    %12 = vector.load %arg4[%c1_11, %c0_12, %c0_13] : memref<2x3x1xf32, #tpu.memory_space<vmem>>, vector<1x3x1xf32>
    %13 = vector.shape_cast %12 : vector<1x3x1xf32> to vector<3x1xf32>
    %14 = vector.broadcast %13 : vector<3x1xf32> to vector<3x256xf32>
    %15 = arith.addf %11, %14 : vector<3x256xf32>
    %16 = arith.subf %15, %8 : vector<3x256xf32>
    %cst_14 = arith.constant 0.000000e+00 : f32
    %17 = vector.broadcast %cst_14 : f32 to vector<3x256xf32>
    %18 = arith.maximumf %16, %17 : vector<3x256xf32>
    %19 = math.absf %16 : vector<3x256xf32>
    %cst_15 = arith.constant 0.000000e+00 : f32
    %20 = vector.broadcast %cst_15 : f32 to vector<3x256xf32>
    %21 = arith.subf %20, %19 : vector<3x256xf32>
    %22 = math.exp %21 : vector<3x256xf32>
    %cst_16 = arith.constant 1.000000e+00 : f32
    %23 = vector.broadcast %cst_16 : f32 to vector<3x256xf32>
    %24 = arith.addf %23, %22 : vector<3x256xf32>
    %25 = math.log %24 : vector<3x256xf32>
    %26 = arith.addf %18, %25 : vector<3x256xf32>
    %cst_17 = arith.constant 0.000000e+00 : f32
    %27 = vector.broadcast %cst_17 : f32 to vector<3x256xf32>
    %28 = arith.subf %27, %26 : vector<3x256xf32>
    %c0_18 = arith.constant 0 : index
    %c0_19 = arith.constant 0 : index
    %c0_20 = arith.constant 0 : index
    %c0_21 = arith.constant 0 : index
    %29 = vector.load %arg5[%c0_18, %c0_19, %c0_20, %c0_21] : memref<1x2x3x256xf32, #tpu.memory_space<vmem>>, vector<1x1x3x256xf32>
    %30 = vector.shape_cast %29 : vector<1x1x3x256xf32> to vector<3x256xf32>
    %31 = vector.shape_cast %28 : vector<3x256xf32> to vector<1x1x3x256xf32>
    tpu.vector_store %arg5[%c0_18, %c0_19, %c0_20, %c0_21], %31 {strides = array<i32>} : memref<1x2x3x256xf32, #tpu.memory_space<vmem>>, vector<1x1x3x256xf32>,
    %32 = arith.subf %16, %26 : vector<3x256xf32>
    %c0_22 = arith.constant 0 : index
    %c1_23 = arith.constant 1 : index
    %c0_24 = arith.constant 0 : index
    %c0_25 = arith.constant 0 : index
    %33 = vector.load %arg5[%c0_22, %c1_23, %c0_24, %c0_25] : memref<1x2x3x256xf32, #tpu.memory_space<vmem>>, vector<1x1x3x256xf32>
    %34 = vector.shape_cast %33 : vector<1x1x3x256xf32> to vector<3x256xf32>
    %35 = vector.shape_cast %32 : vector<3x256xf32> to vector<1x1x3x256xf32>
    tpu.vector_store %arg5[%c0_22, %c1_23, %c0_24, %c0_25], %35 {strides = array<i32>} : memref<1x2x3x256xf32, #tpu.memory_space<vmem>>, vector<1x1x3x256xf32>,
    return
  }
  func.func @transform_0(%arg0: i32, %arg1: i32) -> (i32, i32, i32) {
    %c0_i32 = arith.constant 0 : i32
    %c0_i32_0 = arith.constant 0 : i32
    return %arg0, %c0_i32, %arg1 : i32, i32, i32
  }
  func.func @transform_1(%arg0: i32, %arg1: i32) -> (i32, i32, i32) {
    %c0_i32 = arith.constant 0 : i32
    %c0_i32_0 = arith.constant 0 : i32
    %c0_i32_1 = arith.constant 0 : i32
    %c0_i32_2 = arith.constant 0 : i32
    return %c0_i32, %c0_i32_0, %c0_i32_1 : i32, i32, i32
  }
  func.func @transform_2(%arg0: i32, %arg1: i32) -> (i32, i32, i32) {
    %c0_i32 = arith.constant 0 : i32
    %c0_i32_0 = arith.constant 0 : i32
    %c0_i32_1 = arith.constant 0 : i32
    %c0_i32_2 = arith.constant 0 : i32
    return %c0_i32, %c0_i32_0, %c0_i32_1 : i32, i32, i32
  }
  func.func @transform_3(%arg0: i32, %arg1: i32) -> (i32, i32, i32, i32) {
    %c0_i32 = arith.constant 0 : i32
    %c0_i32_0 = arith.constant 0 : i32
    %c0_i32_1 = arith.constant 0 : i32
    return %arg0, %c0_i32, %c0_i32_0, %arg1 : i32, i32, i32, i32
  }
}

</mosaic_0001>

<bundles_post_ra>
// kernel: class_head_forward.1
= control target key start
LH: loop header
LB: loop body
LE: loop exit
PB: predicated region body
PF: predicated region fallthrough
CT: control target
= control target key end

     0   :  { %s604_s12 = smov 0   ;;  %s606_s13 = smov 0   ;;  %s653_s0 = inlined_call_operand.vmem [shape: f32[2,32,256], index: 0, kind: input, shape index: {}]   ;;  %s654_s1 = inlined_call_operand.vmem [shape: f32[2,3,32], index: 1, kind: input, shape index: {}]   ;;  %s655_s2 = inlined_call_operand.vmem [shape: f32[2,3,1], index: 2, kind: input, shape index: {}]   ;;  %s656_s3 = inlined_call_operand.vmem [shape: f32[2,2,3,256], index: 3, kind: output, shape index: {}]  }
   0x1   :  { %s608_s14 = smov 0  }
   0x2 LB: > { %s25_s15 = sadd.s32 1, %s576_s13  ;;  %p509_p0 = scmp.ge.s32.totalorder %s580_s14, 1  ;;  %s580_s14 = sphi %s608_s14, %s13_s14   ;;  %s576_s13 = sphi %s606_s13, %s658_s13   ;;  %s572_s12 = sphi %s604_s12, %s657_s12  }
   0x3   : > { %p27_p1 = scmp.ge.s32.totalorder %s25_s15, 2  ;;  %p158_p2 = scmp.lt.s32.totalorder %s580_s14, 3 }
   0x5   : > { %s660_s15 = smov (%p27_p1, %s25_s15), 0  ;;  %p159_p3 = pnand %p509_p0, %p158_p2 }
   0x6   : > { %p191_p4 = scmp.lt.s32.totalorder (!%p159_p3), %s572_s12, 1 }
   0x7   : > { %162 = sbr.rel (%p159_p3) target bundleno = 268 (0x10c), region = 32 }
   0xc   : > { %v582_v0 = vmov 0.0   ;;  %v219_v1 = vld [vmem:[%s655_s2] sm:$0x7]  ;;  %s662_s12 = smov (!%p191_p4, %s572_s12), 1  ;;  %v583_v2 = vmov 0   ;;  %vm225_vm0 = vcmask 261120  }
   0xd   : > { %293 = vmatprep.mubr.f32.mxu0 %v582_v0  ;;  %376 = vmatprep.mubr.f32.mxu1 %v582_v0  ;;  %s521_s18 = sshll.u32 %s662_s12, 6  ;;  %v218_v11 = vld [vmem:[%s654_s1] sm:$0x7]  ;;  %v515_v12 = vld [vmem:[%s654_s1 + $0x4] sm:$0x7]  ;;  %s522_s28 = sshll.u32 %s662_s12, 4 }
   0xe   : > { %549 = vset.pattern.permute.xlu0 %v583_v2  ;;  %s198_s21 = scalar_lea.vmem %s653_s0, %s521_s18  ;;  %v516_v13 = vld [vmem:[%s655_s2 + $0x4] sm:$0x7]  ;;  %s208_s4 = scalar_lea.vmem %s656_s3, %s522_s28 }
   0xf   : > { %222 = vperm.xlu0 %549, %v219_v1   ;;  %v217_v3 = vld [vmem:[%s198_s21 + $0x38] sm:$0xff]  ;;  %v216_v4 = vld [vmem:[%s198_s21 + $0x30] sm:$0xff]  ;;  %v215_v5 = vld [vmem:[%s198_s21 + $0x28] sm:$0xff] }
  0x10   : > { %253 = vmatprep.subr.mxu0 %v217_v3  ;;  %336 = vmatprep.subr.mxu1 %v217_v3  ;;  %v214_v6 = vld [vmem:[%s198_s21 + $0x20] sm:$0xff]  ;;  %v213_v7 = vld [vmem:[%s198_s21 + $0x18] sm:$0xff]  ;;  %v212_v8 = vld [vmem:[%s198_s21 + $0x10] sm:$0xff] }
  0x11   : > { %254 = vmatpush1.msra.mxu0 %v216_v4  ;;  %337 = vmatpush1.msra.mxu1 %v216_v4  ;;  %v211_v9 = vld [vmem:[%s198_s21 + $0x8] sm:$0xff]  ;;  %v210_v10 = vld [vmem:[%s198_s21] sm:$0xff] }
  0x12   : > { %255 = vmatprep.subr.mxu0 %v215_v5  ;;  %338 = vmatprep.subr.mxu1 %v215_v5 }
  0x13   : > { %256 = vmatpush1.msra.mxu0 %v214_v6  ;;  %339 = vmatpush1.msra.mxu1 %v214_v6 }
  0x14   : > { %257 = vmatprep.subr.mxu0 %v213_v7  ;;  %340 = vmatprep.subr.mxu1 %v213_v7 }
  0x15   : > { %258 = vmatpush1.msra.mxu0 %v212_v8  ;;  %341 = vmatpush1.msra.mxu1 %v212_v8 }
  0x16   : > { %259 = vmatprep.subr.mxu0 %v211_v9  ;;  %342 = vmatprep.subr.mxu1 %v211_v9 }
  0x17   : > { %260 = vmatpush1.msra.mxu0 %v210_v10  ;;  %343 = vmatpush1.msra.mxu1 %v210_v10 }
  0x18   : > { %514 = vmatmul.mubr.msk.f32.vlgmr.msra.gmra.mxu0 %vm225_vm0, %v218_v11  ;;  %517 = vmatmul.mubr.msk.f32.vlgmr.msra.gmra.mxu1 %vm225_vm0, %v515_v12 }
  0x19   : > { %306 = vperm.xlu0 %549, %v516_v13  }
  0x8a   : > { %v223_v14 = vpop.permute.xlu0 %222 }
  0x94   : > { %v307_v15 = vpop.permute.xlu0 %306 }
  0xd8   : > { %v295_v16 = vpop.f32.mrf.mxu0  ;;  %v378_v17 = vpop.f32.mrf.mxu1 }
  0xd9   : > { %v296_v18 = vadd.f32 %v295_v16, %v223_v14  ;;  %v379_v19 = vadd.f32 %v378_v17, %v307_v15 }
  0xda   : > { %v297_v20 = vpop.f32.mrf.mxu0  ;;  %v380_v21 = vpop.f32.mrf.mxu1 }
  0xdb   : > { %v383_v22 = vsub.f32 %v379_v19, %v296_v18  ;;  %v298_v23 = vadd.f32 %v297_v20, %v223_v14  ;;  %v381_v24 = vadd.f32 %v380_v21, %v307_v15 }
  0xdd   : > { %v387_v25 = vand.u32 2147483647, %v383_v22  ;;  %v384_v26 = vsub.f32 %v381_v24, %v298_v23  ;;  %v385_v37 = vmax.f32 %v383_v22, 0.0 }
  0xdf   : > { %v389_v27 = vsub.f32 0.0, %v387_v25  ;;  %v388_v28 = vand.u32 2147483647, %v384_v26  ;;  %v386_v41 = vmax.f32 %v384_v26, 0.0 }
  0xe1   : > { %v391_v29 = vmul.f32 1.442695, %v389_v27  ;;  %v390_v30 = vsub.f32 0.0, %v388_v28 }
  0xe3   : > { %550 = vpow2.f32 %v391_v29  ;;  %v393_v31 = vmul.f32 1.442695, %v390_v30 }
  0xe5   : > { %552 = vpow2.f32 %v393_v31 }
  0xf0   : > { %v551_v32 = vpop.eup %550 }
  0xf1   : > { %v395_v33 = vadd.f32 1.0, %v551_v32 }
  0xf2   : > { %v553_v34 = vpop.eup %552 }
  0xf3   : > { %554 = vlog2.f32 %v395_v33  ;;  %v396_v35 = vadd.f32 1.0, %v553_v34 }
  0xf5   : > { %556 = vlog2.f32 %v396_v35 }
 0x100   : > { %v555_v36 = vpop.eup %554 }
 0x101   : > { %v398_v38 = vmul.f32 0.6931472, %v555_v36 }
 0x102   : > { %v557_v39 = vpop.eup %556 }
 0x103   : > { %v401_v40 = vadd.f32 %v398_v38, %v385_v37  ;;  %v400_v42 = vmul.f32 0.6931472, %v557_v39 }
 0x105   : > { %v402_v43 = vadd.f32 %v400_v42, %v386_v41  ;;  %v403_v44 = vsub.f32 0.0, %v401_v40  ;;  %v410_v45 = vsub.f32 %v383_v22, %v401_v40 }
 0x107   : > { %v404_v46 = vsub.f32 0.0, %v402_v43  ;;  %v411_v47 = vsub.f32 %v384_v26, %v402_v43 }
 0x109   : > { %v407_v48 = vcombine.low %v403_v44, %v404_v46  ;;  %v414_v49 = vcombine.low %v410_v45, %v411_v47 }
 0x10b   : > { %409 = vst [vmem:[%s208_s4] sm:$0x77] %v407_v48  ;;  %518 = vst [vmem:[%s208_s4 + $0x8] sm:$0x77] %v414_v49 }
 0x10c PF: > { %s13_s14 = sadd.s32 1, %s580_s14   ;;  %s657_s12 = smov %s576_s13 }
 0x10d   : > { %p10_p5 = scmp.ge.s32.totalorder %s13_s14, 4   ;;  %s658_s13 = smov %s660_s15 }
 0x10f   :  { %12 = sbr.rel (!%p10_p5) target bundleno = 2 (0x2), region = 65 }

</bundles_post_ra>
